<compile_context>
chip_gen: v5e
topology: v5e:2x2
jax: 0.10.0
libtpu: 0.0.40
codegen_flags: <defaults>
</compile_context>

<pallas_src>
import functools

import jax
import jax.numpy as jnp
from jax.experimental import pallas as pl
from jax.experimental.pallas import tpu as pltpu


def _mean_pool_kernel(denom_ref, mask_ref, h_ref, o_ref, *, t_s, seq_len):
    """One grid step.  Grid: (batch blocks, hidden blocks, sequence blocks).

    denom_ref: (bB, 1)        f32  clamp(sum(mask), 1e-9) per row
    mask_ref:  (bB, t_s, 1)   f32  mask column for this sequence tile
    h_ref:     (bB, t_s, tH)  input dtype, hidden-state tile
    o_ref:     (bB, tH)       f32  output block, resident accumulator over k
    """
    k = pl.program_id(2)

    @pl.when(k == 0)
    def _init():
        o_ref[...] = jnp.zeros_like(o_ref)

    # Exact f32 math (matches torch's mask.float() multiply; avoids bf16 MXU
    # truncation of f32 hidden states).
    h = h_ref[...].astype(jnp.float32)        # (bB, t_s, tH)
    m = mask_ref[...]                         # (bB, t_s, 1), already f32

    contrib = h * m                           # lane-broadcast multiply (VPU)

    if seq_len % t_s != 0:
        # Ragged final sequence tile: rows past the end of S hold undefined
        # (stale VMEM) data in both h and the mask; zero their contribution so
        # NaN/Inf garbage cannot poison the sum.
        s_idx = k * t_s + jax.lax.broadcasted_iota(jnp.int32, (1, t_s, 1), 1)
        contrib = jnp.where(s_idx < seq_len, contrib, 0.0)

    # Masked sum over this sequence tile: f32 sublane reduce.
    o_ref[...] += jnp.sum(contrib, axis=1)    # (bB, tH)

    @pl.when(k == pl.num_programs(2) - 1)
    def _finalize():
        o_ref[...] = o_ref[...] / denom_ref[...]


# Conservative per-sequence-row VMEM cost of the lane-padded (..., 1) f32 mask
# column block (one (8,128) tile row per sequence position).
_MASK_COL_BYTES = 512


def _choose_tiles(B, S, H, itemsize, block_budget_bytes):
    """Pick (bB, tS, tH): one hidden block ~block_budget_bytes, 128-aligned
    sequence tiles (covers 8/16/32 sublane packing for f32/bf16/int8), batch
    packing when rows are small, and an H split for v7x's two TensorCores."""
    # Split H into two 128-aligned halves when it divides cleanly (v7x
    # megacore parallelism; neutral on single-core v5e/v6e).
    tH = H // 2 if (H % 256 == 0 and H > 256) else H

    bytes_per_row = tH * itemsize + _MASK_COL_BYTES      # per sequence position
    row_bytes = S * bytes_per_row
    if row_bytes <= block_budget_bytes:
        # Whole rows are small: pack several batch rows per grid step so DMAs
        # stay long and the ~0.35us/step overhead is amortized.
        bB = max(1, block_budget_bytes // row_bytes)
        if bB >= B:
            bB = B
        elif bB >= 8:
            bB = (bB // 8) * 8        # sublane-friendly mask/output blocks
        tS = S
    else:
        # Long rows: stream the sequence axis in 128-lane-aligned tiles; the
        # ragged tail is masked inside the kernel.
        bB = 1
        tS = (block_budget_bytes // bytes_per_row) // 128 * 128
        tS = max(128, min(tS, S))
    return bB, tS, tH


def mean_pooling(last_hidden_state, attention_mask):
    """Pallas equivalent of MeanPooling.forward.

    last_hidden_state: [B, S, H] (any float dtype; accumulated exactly in f32)
    attention_mask:    [B, S]    (bool / int / float)
    returns:           [B, H] float32
    """
    B, S, H = last_hidden_state.shape
    itemsize = jnp.dtype(last_hidden_state.dtype).itemsize

    # Generation-aware sizing: big streaming blocks, with headroom on
    # v7x (64 MiB VMEM) vs v5e/v6e (128 MiB).
    try:
        vmem_cap = int(getattr(pltpu.get_tpu_info(), "vmem_capacity_bytes",
                               64 * 1024 * 1024))
    except Exception:  # pragma: no cover - info query is best-effort
        vmem_cap = 64 * 1024 * 1024
    if vmem_cap >= 100 * 1024 * 1024:          # v5e / v6e (128 MiB VMEM)
        block_budget, vmem_limit = 6 * 1024 * 1024, 64 * 1024 * 1024
    else:                                      # v7x (64 MiB) or unknown
        block_budget, vmem_limit = 4 * 1024 * 1024, 48 * 1024 * 1024

    bB, tS, tH = _choose_tiles(B, S, H, itemsize, block_budget)
    n_b = pl.cdiv(B, bB)
    n_h = H // tH
    n_k = pl.cdiv(S, tS)

    # Cheap O(B*S) prep in XLA: exact f32 mask, per-row denominator with the
    # torch clamp(min=1e-9), and a trailing unit axis so the mask enters the
    # kernel in column (sublane-major) orientation -> pure lane-broadcast
    # multiply, no in-kernel relayout, no per-step mask reduction.
    m32 = attention_mask.astype(jnp.float32)                          # (B, S)
    denom = jnp.maximum(jnp.sum(m32, axis=1, keepdims=True), 1e-9)    # (B, 1)
    mask_col = m32[:, :, None]                                        # (B, S, 1)

    kernel = functools.partial(_mean_pool_kernel, t_s=tS, seq_len=S)

    return pl.pallas_call(
        kernel,
        out_shape=jax.ShapeDtypeStruct((B, H), jnp.float32),
        grid=(n_b, n_h, n_k),
        in_specs=[
            pl.BlockSpec((bB, 1), lambda b, j, k: (b, 0)),           # denominator
            pl.BlockSpec((bB, tS, 1), lambda b, j, k: (b, k, 0)),    # mask column
            pl.BlockSpec((bB, tS, tH), lambda b, j, k: (b, k, j)),   # hidden tile
            # TODO(synk): if an xprof trace on v7x shows exposed DMA waits at
            # step boundaries, add pipeline_mode=pl.Buffered(3) to the hidden
            # spec (sweep before committing).
        ],
        out_specs=pl.BlockSpec((bB, tH), lambda b, j, k: (b, j)),
        compiler_params=pltpu.CompilerParams(
            dimension_semantics=("parallel", "parallel", "arbitrary"),
            vmem_limit_bytes=vmem_limit,
        ),
    )(denom, mask_col, last_hidden_state)


def _reference(last_hidden_state, attention_mask):
    # Pure-JAX reference mirroring the PyTorch forward exactly.
    h = last_hidden_state.astype(jnp.float32)
    m = attention_mask.astype(jnp.float32)[:, :, None]
    sum_embeddings = jnp.sum(h * m, axis=1)
    sum_mask = jnp.maximum(jnp.sum(m, axis=1), 1e-9)
    return sum_embeddings / sum_mask


if __name__ == "__main__":
    k_h1, k_m1, k_h2, k_m2 = jax.random.split(jax.random.PRNGKey(0), 4)

    # --- Case 1: tiny shapes implied by the module (single-block path). ---
    B, S, H = 2, 8, 32
    hidden = jax.random.normal(k_h1, (B, S, H), dtype=jnp.float32)
    mask = (jax.random.uniform(k_m1, (B, S)) > 0.4).astype(jnp.int32)
    mask = mask.at[:, 0].set(1)             # at least one valid token per row

    out = jax.block_until_ready(mean_pooling(hidden, mask))
    ref = _reference(hidden, mask)
    assert out.shape == (B, H) and out.dtype == jnp.float32
    assert jnp.allclose(out, ref, atol=1e-5, rtol=1e-5), "case 1 mismatch"

    # --- Case 2: exercises sequence tiling with a ragged tail, the H split,
    #     multi-batch grid, and bf16 inputs with exact f32 accumulation. ---
    B2, S2, H2 = 3, 4200, 1024
    hidden2 = jax.random.normal(k_h2, (B2, S2, H2), dtype=jnp.bfloat16)
    mask2 = (jax.random.uniform(k_m2, (B2, S2)) > 0.5).astype(jnp.int32)
    mask2 = mask2.at[:, 0].set(1)

    out2 = jax.block_until_ready(mean_pooling(hidden2, mask2))
    ref2 = _reference(hidden2, mask2)
    assert out2.shape == (B2, H2) and out2.dtype == jnp.float32
    assert jnp.allclose(out2, ref2, atol=1e-4, rtol=1e-3), "case 2 mismatch"

    print("KERNEL_OK")
</pallas_src>

<mosaic_0001>
module attributes {stable_mosaic.version = 11 : i64} {
  func.func @_mean_pool_kernel(%arg0: i32, %arg1: i32, %arg2: i32, %arg3: memref<2x1xf32, #tpu.memory_space<vmem>>, %arg4: memref<2x8x1xf32, #tpu.memory_space<vmem>>, %arg5: memref<2x8x32xf32, #tpu.memory_space<vmem>>, %arg6: memref<2x32xf32, #tpu.memory_space<vmem>>) attributes {dimension_semantics = [#tpu.dimension_semantics<parallel>, #tpu.dimension_semantics<parallel>, #tpu.dimension_semantics<arbitrary>], iteration_bounds = array<i64: 1, 1, 1>, scalar_prefetch = 0 : i64, scratch_operands = 0 : i64, tpu.core_type = #tpu.core_type<tc>, window_params = [{transform_indices = @transform_0, window_bounds = array<i64: 2, 1>}, {transform_indices = @transform_1, window_bounds = array<i64: 2, 8, 1>}, {transform_indices = @transform_2, window_bounds = array<i64: 2, 8, 32>}, {transform_indices = @transform_3, window_bounds = array<i64: 2, 32>}]} {
    %c0_i32 = arith.constant 0 : i32
    %0 = arith.cmpi eq, %arg2, %c0_i32 : i32
    %1 = arith.extui %0 : i1 to i32
    %c0_i32_0 = arith.constant 0 : i32
    %2 = arith.cmpi ne, %1, %c0_i32_0 : i32
    scf.if %2 {
      %cst_12 = arith.constant 0.000000e+00 : f32
      %14 = vector.broadcast %cst_12 : f32 to vector<2x32xf32>
      %c0_13 = arith.constant 0 : index
      %c0_14 = arith.constant 0 : index
      %15 = vector.load %arg6[%c0_13, %c0_14] : memref<2x32xf32, #tpu.memory_space<vmem>>, vector<2x32xf32>
      tpu.vector_store %arg6[%c0_13, %c0_14], %14 {strides = array<i32>} : memref<2x32xf32, #tpu.memory_space<vmem>>, vector<2x32xf32>,
    } else {
    }
    %c0 = arith.constant 0 : index
    %c0_1 = arith.constant 0 : index
    %c0_2 = arith.constant 0 : index
    %3 = vector.load %arg5[%c0, %c0_1, %c0_2] : memref<2x8x32xf32, #tpu.memory_space<vmem>>, vector<2x8x32xf32>
    %c0_3 = arith.constant 0 : index
    %c0_4 = arith.constant 0 : index
    %c0_5 = arith.constant 0 : index
    %4 = vector.load %arg4[%c0_3, %c0_4, %c0_5] : memref<2x8x1xf32, #tpu.memory_space<vmem>>, vector<2x8x1xf32>
    %5 = vector.broadcast %4 : vector<2x8x1xf32> to vector<2x8x32xf32>
    %6 = arith.mulf %3, %5 : vector<2x8x32xf32>
    %c0_6 = arith.constant 0 : index
    %c0_7 = arith.constant 0 : index
    %7 = vector.load %arg6[%c0_6, %c0_7] : memref<2x32xf32, #tpu.memory_space<vmem>>, vector<2x32xf32>
    %cst = arith.constant dense<0.000000e+00> : vector<2x32xf32>
    %8 = vector.multi_reduction <add>, %6, %cst [1] : vector<2x8x32xf32> to vector<2x32xf32>
    %9 = arith.addf %7, %8 : vector<2x32xf32>
    %c0_8 = arith.constant 0 : index
    %c0_9 = arith.constant 0 : index
    %10 = vector.load %arg6[%c0_8, %c0_9] : memref<2x32xf32, #tpu.memory_space<vmem>>, vector<2x32xf32>
    tpu.vector_store %arg6[%c0_8, %c0_9], %9 {strides = array<i32>} : memref<2x32xf32, #tpu.memory_space<vmem>>, vector<2x32xf32>,
    %c0_i32_10 = arith.constant 0 : i32
    %11 = arith.cmpi eq, %arg2, %c0_i32_10 : i32
    %12 = arith.extui %11 : i1 to i32
    %c0_i32_11 = arith.constant 0 : i32
    %13 = arith.cmpi ne, %12, %c0_i32_11 : i32
    scf.if %13 {
      %c0_12 = arith.constant 0 : index
      %c0_13 = arith.constant 0 : index
      %14 = vector.load %arg6[%c0_12, %c0_13] : memref<2x32xf32, #tpu.memory_space<vmem>>, vector<2x32xf32>
      %c0_14 = arith.constant 0 : index
      %c0_15 = arith.constant 0 : index
      %15 = vector.load %arg3[%c0_14, %c0_15] : memref<2x1xf32, #tpu.memory_space<vmem>>, vector<2x1xf32>
      %16 = vector.broadcast %15 : vector<2x1xf32> to vector<2x32xf32>
      %17 = arith.divf %14, %16 : vector<2x32xf32>
      %c0_16 = arith.constant 0 : index
      %c0_17 = arith.constant 0 : index
      %18 = vector.load %arg6[%c0_16, %c0_17] : memref<2x32xf32, #tpu.memory_space<vmem>>, vector<2x32xf32>
      tpu.vector_store %arg6[%c0_16, %c0_17], %17 {strides = array<i32>} : memref<2x32xf32, #tpu.memory_space<vmem>>, vector<2x32xf32>,
    } else {
    }
    return
  }
  func.func @transform_0(%arg0: i32, %arg1: i32, %arg2: i32) -> (i32, i32) {
    %c0_i32 = arith.constant 0 : i32
    %c0_i32_0 = arith.constant 0 : i32
    return %arg0, %c0_i32 : i32, i32
  }
  func.func @transform_1(%arg0: i32, %arg1: i32, %arg2: i32) -> (i32, i32, i32) {
    %c0_i32 = arith.constant 0 : i32
    %c0_i32_0 = arith.constant 0 : i32
    return %arg0, %arg2, %c0_i32 : i32, i32, i32
  }
  func.func @transform_2(%arg0: i32, %arg1: i32, %arg2: i32) -> (i32, i32, i32) {
    %c0_i32 = arith.constant 0 : i32
    return %arg0, %arg2, %arg1 : i32, i32, i32
  }
  func.func @transform_3(%arg0: i32, %arg1: i32, %arg2: i32) -> (i32, i32) {
    %c0_i32 = arith.constant 0 : i32
    return %arg0, %arg1 : i32, i32
  }
}

</mosaic_0001>

<bundles_post_ra>
// kernel: tpu_custom_call.1
= control target key start
LH: loop header
LB: loop body
LE: loop exit
PB: predicated region body
PF: predicated region fallthrough
CT: control target
= control target key end

     0   :  { %v136_v2 = vmov 0   ;;  %s180_s0 = inlined_call_operand.vmem [shape: f32[2,1], index: 0, kind: input, shape index: {}]   ;;  %s181_s1 = inlined_call_operand.vmem [shape: f32[2,8,1], index: 1, kind: input, shape index: {}]   ;;  %s182_s2 = inlined_call_operand.vmem [shape: f32[2,8,32], index: 2, kind: input, shape index: {}]   ;;  %s183_s3 = inlined_call_operand.hbm [shape: f32[2,32], index: 3, kind: output, shape index: {}]  }
   0x1   :  { %v23_v0 = vld [vmem:[%s181_s1] sm:$0xff]  ;;  %106 = vset.pattern.permute.xlu0 %v136_v2  ;;  %107 = vset.pattern.permute.xlu1 %v136_v2 }
   0x2   :  { %v65_v1 = vld [vmem:[%s180_s0] sm:$0x3] }
   0x3   :  { %8 = vsyncpa [#allocation3], 0  ;;  %27 = vperm.xlu0 %106, %v23_v0   ;;  %68 = vperm.xlu1 %107, %v65_v1   ;;  %v24_v3 = vld [vmem:[%s181_s1 + $0x8] sm:$0xff]  ;;  %vm19_vm0 = vcmask 254976   ;;  %v137_v4 = vmov 0.0   ;;  %v21_v5 = vld [vmem:[%s182_s2] sm:$0xff] }
   0x4   :  { %20 = vst.msk [vmem:[#allocation2] sm:$0x3] %vm19_vm0, %v137_v4  ;;  %vm38_vm1 = vcmask 261120   ;;  %v22_v12 = vld [vmem:[%s182_s2 + $0x8] sm:$0xff]  ;;  %vm55_vm2 = vcmask 1041409   ;;  %s138_s1 = smov [#allocation2]  }
   0x5   :  { %s92_s2 = sshll.u32 %s138_s1, 4  ;;  %s94_s23 = sshll.u32 %s183_s3, 4  ;;  %s93_s2 = int_to_ptr.vmem [resolvable:$true] %s92_s2  ;;  %s95_s23 = int_to_ptr.hbm [resolvable:$true] %s94_s23 }
   0xb   :  { %32 = vperm.xlu0 %106, %v24_v3   ;;  %v37_v29 = vld [vmem:[#allocation2] sm:$0x3] }
  0x75   :  { %v28_v6 = vpop.permute.xlu0 %27  ;;  %v69_v9 = vpop.permute.xlu1 %68 }
  0x76   :  { %v35_v7 = vmul.f32 %v28_v6, %v21_v5  ;;  %108 = vrcp.f32 %v69_v9  ;;  %vm76_vm3 = vweird.f32 %v69_v9  ;;  %v82_v33 = vand.u32 2147483648, %v69_v9 }
  0x77   :  { %v80_v35 = vand.u32 2147483647, %v69_v9 }
  0x78   :  { %v39_v8 = vsel %vm38_vm1, %v35_v7, 0.0  ;;  %v83_v36 = vor.u32 1.1754944e-38, %v82_v33 }
  0x79   :  { %v40_v10 = vrot.slane %v39_v8, 4  ;;  %vm81_vm6 = vcmp.eq.f32.partialorder %v80_v35, 8.507059e+37 }
  0x7b   :  { %v41_v11 = vadd.f32 %v40_v10, %v39_v8 }
  0x7c   :  { %v109_v17 = vpop.eup %108 }
  0x7d   :  { %v33_v13 = vpop.permute.xlu0 %32  ;;  %v42_v15 = vrot.slane %v41_v11, 2  ;;  %v72_v21 = vmul.f32 %v109_v17, %v69_v9  ;;  %vm77_vm4 = vweird.f32 %v109_v17 }
  0x7e   :  { %v36_v14 = vmul.f32 %v33_v13, %v22_v12  ;;  %vm78_vm5 = vmor %vm76_vm3, %vm77_vm4 }
  0x7f   :  { %v43_v19 = vadd.f32 %v42_v15, %v41_v11  ;;  %v73_v25 = vsub.f32 1.0, %v72_v21 }
  0x80   :  { %v46_v16 = vsel %vm38_vm1, %v36_v14, 0.0 }
  0x81   :  { %v47_v18 = vrot.slane %v46_v16, 4  ;;  %v44_v23 = vrot.slane %v43_v19, 1  ;;  %v74_v30 = vmul.f32 %v109_v17, %v73_v25 }
  0x83   :  { %v48_v20 = vadd.f32 %v47_v18, %v46_v16  ;;  %v45_v27 = vadd.f32 %v44_v23, %v43_v19  ;;  %v75_v34 = vadd.f32 %v109_v17, %v74_v30 }
  0x85   :  { %v49_v22 = vrot.slane %v48_v20, 2  ;;  %v79_v37 = vsel %vm78_vm5, %v109_v17, %v75_v34 }
  0x86   :  { %v84_v38 = vsel %vm81_vm6, %v83_v36, %v79_v37 }
  0x87   :  { %v50_v24 = vadd.f32 %v49_v22, %v48_v20 }
  0x89   :  { %v51_v26 = vrot.slane %v50_v24, 1 }
  0x8b   :  { %v52_v28 = vadd.f32 %v51_v26, %v50_v24 }
  0x8d   :  { %v56_v31 = vsel %vm55_vm2, %v52_v28, %v45_v27 }
  0x8e   :  { %v58_v32 = vadd.f32 %v56_v31, %v37_v29 }
  0x90   :  { %60 = vst.msk [vmem:[#allocation2] sm:$0x3] %vm19_vm0, %v58_v32 }
  0x97   :  { %v64_v39 = vld [vmem:[#allocation2] sm:$0x3] }
  0x98   :  { %v85_v40 = vmul.f32 %v84_v38, %v64_v39 }
  0x9a   :  { %86 = vst.msk [vmem:[#allocation2] sm:$0x3] %vm19_vm0, %v85_v40 }
  0x9b   :  { %97 = dma.vmem_to_hbm [thread:$0]  %s93_s2, 32, %s95_s23, [#allocation3]  }
  0x9c   :  { %134 = dma.done.wait [#allocation3], 32  }
  0x9d   :  { %135 = vsyncadd [#allocation3], 4294967264 }
  0x9e   :  { %102 = vsyncpa [#allocation3], 1 }

</bundles_post_ra>
